<compile_context>
chip_gen: v6e
topology: v6e:2x2x1
jax: 0.10.0
libtpu: 0.0.40
codegen_flags: <defaults>
</compile_context>

<pallas_src>
import functools

import jax
import jax.numpy as jnp
from jax.experimental import pallas as pl
from jax.experimental.pallas import tpu as pltpu


def _seed_mix_scalar(seed_ref):
    """Per-grid-step scalar: folds the seed and the grid index into one word."""
    pid_u = pl.program_id(0).astype(jnp.uint32)
    seed_u = seed_ref[0].astype(jnp.uint32)
    return (seed_u * jnp.uint32(0x9E3779B1)) ^ (pid_u * jnp.uint32(0x85EBCA77))


def _mix(h):
    """2-multiply integer mixer (lowbias32-style, one round fewer)."""
    h = (h ^ (h >> jnp.uint32(16))) * jnp.uint32(0x7FEB352D)
    h = (h ^ (h >> jnp.uint32(15))) * jnp.uint32(0x846CA68B)
    h = h ^ (h >> jnp.uint32(16))
    return h


def _dropout_kernel_dual(seed_ref, x_ref, o_ref, *, thr16, scale, half_cols):
    """One 32-bit hash per TWO elements: compare 16-bit halves vs a 16-bit threshold."""
    seed_mix = _seed_mix_scalar(seed_ref)

    hshape = (x_ref.shape[0], half_cols)
    row_ids = jax.lax.broadcasted_iota(jnp.uint32, hshape, 0)
    col_ids = jax.lax.broadcasted_iota(jnp.uint32, hshape, 1)
    h = _mix((row_ids * jnp.uint32(half_cols) + col_ids) ^ seed_mix)

    thr = jnp.uint32(thr16)
    keep_lo = (h & jnp.uint32(0xFFFF)) >= thr
    keep_hi = (h >> jnp.uint32(16)) >= thr

    s = jnp.asarray(scale, dtype=x_ref.dtype)
    zero = jnp.zeros((), dtype=x_ref.dtype)
    # half_cols is a multiple of 128 -> these static slices are vreg-aligned.
    o_ref[:, :half_cols] = jnp.where(keep_lo, x_ref[:, :half_cols] * s, zero)
    o_ref[:, half_cols:] = jnp.where(keep_hi, x_ref[:, half_cols:] * s, zero)


def _dropout_kernel_single(seed_ref, x_ref, o_ref, *, thr32, scale, cols):
    """Fallback: one 32-bit hash per element (used when cols % 256 != 0)."""
    seed_mix = _seed_mix_scalar(seed_ref)

    shape = x_ref.shape
    row_ids = jax.lax.broadcasted_iota(jnp.uint32, shape, 0)
    col_ids = jax.lax.broadcasted_iota(jnp.uint32, shape, 1)
    h = _mix((row_ids * jnp.uint32(cols) + col_ids) ^ seed_mix)

    keep = h >= jnp.uint32(thr32)
    x = x_ref[...]
    o_ref[...] = jnp.where(keep, x * jnp.asarray(scale, dtype=x.dtype),
                           jnp.zeros((), dtype=x.dtype))


def _choose_tiling(n):
    """Pick (cols, rows, rows_pad, block_rows) for a lane-dense 2-D view of n elems."""
    cols = None
    # Wide candidate list of 128-multiples so real NCHW sizes avoid the pad path.
    for c in (1024, 896, 768, 640, 512, 384, 256, 128):
        if n % c == 0:
            cols = c
            break
    if cols is None:
        cols = 128  # ragged tail -> pad fallback

    rows = -(-n // cols)
    target_rows = 512  # 512 x 1024 f32 = 2 MiB/block; ~8 MiB live double-buffered.

    if rows <= target_rows:
        # Keep the grid >= 2 when it's free, so v7x can use both TensorCores.
        if rows >= 16 and rows % 16 == 0:
            block_rows = rows // 2  # multiple of 8 -> satisfies (8,128) tiling
        else:
            block_rows = rows       # full extent -> no (8,128) constraint
        rows_pad = rows
    else:
        block_rows = None
        d = target_rows
        while d >= 8:               # largest multiple-of-8 divisor of rows <= 512
            if rows % d == 0:
                block_rows = d
                break
            d -= 8
        if block_rows is None:      # rare: rows has no usable divisor -> pad
            block_rows = target_rows
            rows_pad = -(-rows // block_rows) * block_rows
        else:
            rows_pad = rows
    return cols, rows, rows_pad, block_rows


def mc_dropout(x, *, p=0.5, seed=0):
    """Monte-Carlo dropout: dropout is always applied (training=True)."""
    p = float(p)
    if p == 0.0:
        return x
    if p >= 1.0:
        # Everything dropped; 1/(1-p) undefined, output is all zeros (matches torch).
        return jnp.zeros_like(x)

    orig_shape = x.shape
    dtype = x.dtype
    n = x.size

    cols, rows, rows_pad, block_rows = _choose_tiling(n)

    need_pad = (rows * cols != n) or (rows_pad != rows)
    if need_pad:
        xf = jnp.ravel(x)
        xf = jnp.pad(xf, (0, rows_pad * cols - n))
        x2 = xf.reshape(rows_pad, cols)
    else:
        x2 = x.reshape(rows_pad, cols)  # layout-free view, no extra HBM pass

    grid = (rows_pad // block_rows,)
    scale = 1.0 / (1.0 - p)
    seed_arr = jnp.asarray([seed], dtype=jnp.int32)

    # Thresholds are capped, so p extremely close to 1.0 keeps elements with
    # probability 2^-16 (dual path) / 2^-32 (single path) instead of exactly
    # 1-p -- negligible for dropout.
    if cols % 256 == 0:
        thr16 = min(int(round(p * 65536.0)), 65535)
        kernel = functools.partial(_dropout_kernel_dual, thr16=thr16,
                                   scale=scale, half_cols=cols // 2)
    else:
        thr32 = min(int(round(p * 4294967296.0)), 4294967295)
        kernel = functools.partial(_dropout_kernel_single, thr32=thr32,
                                   scale=scale, cols=cols)

    out2 = pl.pallas_call(
        kernel,
        out_shape=jax.ShapeDtypeStruct((rows_pad, cols), dtype),
        grid_spec=pltpu.PrefetchScalarGridSpec(
            num_scalar_prefetch=1,
            grid=grid,
            in_specs=[pl.BlockSpec((block_rows, cols), lambda i, seed_ref: (i, 0))],
            out_specs=pl.BlockSpec((block_rows, cols), lambda i, seed_ref: (i, 0)),
        ),
        compiler_params=pltpu.CompilerParams(
            dimension_semantics=("parallel",)),
    )(seed_arr, x2)

    if need_pad:
        return out2.reshape(-1)[:n].reshape(orig_shape)
    return out2.reshape(orig_shape)


if __name__ == "__main__":
    key = jax.random.PRNGKey(0)
    # NCHW input, consistent with the PyTorch module's expected conv-style input.
    x = jax.random.normal(key, (2, 4, 16, 16), dtype=jnp.float32)

    p = 0.5
    y = jax.block_until_ready(mc_dropout(x, p=p, seed=1234))

    # Sanity checks on dropout semantics.
    assert y.shape == x.shape and y.dtype == x.dtype
    kept_mask = y != 0.0
    dropped = int(jnp.sum(~kept_mask))
    kept_ok = bool(
        jnp.allclose(
            jnp.where(kept_mask, y, 0.0),
            jnp.where(kept_mask, x / (1.0 - p), 0.0),
            rtol=1e-6,
            atol=1e-6,
        )
    )
    frac_dropped = dropped / x.size
    assert kept_ok, "kept elements must equal x / (1-p)"
    assert 0.35 < frac_dropped < 0.65, f"drop fraction {frac_dropped} far from p={p}"

    # Different seeds give different masks.
    y2 = jax.block_until_ready(mc_dropout(x, p=p, seed=4321))
    assert bool(jnp.any((y2 != 0.0) != kept_mask))

    # Edge cases.
    assert bool(jnp.all(mc_dropout(x, p=0.0) == x))
    assert bool(jnp.all(mc_dropout(x, p=1.0) == 0.0))

    print("KERNEL_OK")
</pallas_src>

<mosaic_0001>
module attributes {stable_mosaic.version = 11 : i64} {
  func.func @_dropout_kernel_dual(%arg0: i32, %arg1: memref<1xi32, #tpu.memory_space<smem>>, %arg2: memref<2x1024xf32, #tpu.memory_space<vmem>>, %arg3: memref<2x1024xf32, #tpu.memory_space<vmem>>) attributes {dimension_semantics = [#tpu.dimension_semantics<parallel>], iteration_bounds = array<i64: 1>, scalar_prefetch = 1 : i64, scratch_operands = 0 : i64, tpu.core_type = #tpu.core_type<tc>, window_params = [{transform_indices = @transform_0, window_bounds = array<i64: 2, 1024>}, {transform_indices = @transform_1, window_bounds = array<i64: 2, 1024>}]} {
    %c0 = arith.constant 0 : index
    %0 = memref.load %arg1[%c0] : memref<1xi32, #tpu.memory_space<smem>>
    %c-1640531535_i32 = arith.constant -1640531535 : i32
    %1 = arith.muli %0, %c-1640531535_i32 : i32
    %c-2048144777_i32 = arith.constant -2048144777 : i32
    %2 = arith.muli %arg0, %c-2048144777_i32 : i32
    %3 = arith.xori %1, %2 : i32
    %4 = tpu.iota {dimensions = array<i32: 0>} : vector<2x512xi32>
    %5 = tpu.iota {dimensions = array<i32: 1>} : vector<2x512xi32>
    %c512_i32 = arith.constant 512 : i32
    %6 = vector.broadcast %c512_i32 : i32 to vector<2x512xi32>
    %7 = arith.muli %4, %6 : vector<2x512xi32>
    %8 = arith.addi %7, %5 : vector<2x512xi32>
    %9 = vector.broadcast %3 : i32 to vector<2x512xi32>
    %10 = arith.xori %8, %9 : vector<2x512xi32>
    %c16_i32 = arith.constant 16 : i32
    %11 = vector.broadcast %c16_i32 : i32 to vector<2x512xi32>
    %12 = arith.shrui %10, %11 : vector<2x512xi32>
    %13 = arith.xori %10, %12 : vector<2x512xi32>
    %c2146121005_i32 = arith.constant 2146121005 : i32
    %14 = vector.broadcast %c2146121005_i32 : i32 to vector<2x512xi32>
    %15 = arith.muli %13, %14 : vector<2x512xi32>
    %c15_i32 = arith.constant 15 : i32
    %16 = vector.broadcast %c15_i32 : i32 to vector<2x512xi32>
    %17 = arith.shrui %15, %16 : vector<2x512xi32>
    %18 = arith.xori %15, %17 : vector<2x512xi32>
    %c-2073254261_i32 = arith.constant -2073254261 : i32
    %19 = vector.broadcast %c-2073254261_i32 : i32 to vector<2x512xi32>
    %20 = arith.muli %18, %19 : vector<2x512xi32>
    %c16_i32_0 = arith.constant 16 : i32
    %21 = vector.broadcast %c16_i32_0 : i32 to vector<2x512xi32>
    %22 = arith.shrui %20, %21 : vector<2x512xi32>
    %23 = arith.xori %20, %22 : vector<2x512xi32>
    %c65535_i32 = arith.constant 65535 : i32
    %24 = vector.broadcast %c65535_i32 : i32 to vector<2x512xi32>
    %25 = arith.andi %23, %24 : vector<2x512xi32>
    %c32768_i32 = arith.constant 32768 : i32
    %26 = vector.broadcast %c32768_i32 : i32 to vector<2x512xi32>
    %27 = arith.cmpi uge, %25, %26 : vector<2x512xi32>
    %c16_i32_1 = arith.constant 16 : i32
    %28 = vector.broadcast %c16_i32_1 : i32 to vector<2x512xi32>
    %29 = arith.shrui %23, %28 : vector<2x512xi32>
    %c32768_i32_2 = arith.constant 32768 : i32
    %30 = vector.broadcast %c32768_i32_2 : i32 to vector<2x512xi32>
    %31 = arith.cmpi uge, %29, %30 : vector<2x512xi32>
    %c0_3 = arith.constant 0 : index
    %c0_4 = arith.constant 0 : index
    %32 = vector.load %arg2[%c0_3, %c0_4] : memref<2x1024xf32, #tpu.memory_space<vmem>>, vector<2x512xf32>
    %cst = arith.constant 2.000000e+00 : f32
    %33 = vector.broadcast %cst : f32 to vector<2x512xf32>
    %34 = arith.mulf %32, %33 : vector<2x512xf32>
    %cst_5 = arith.constant 0.000000e+00 : f32
    %35 = vector.broadcast %cst_5 : f32 to vector<2x512xf32>
    %36 = arith.select %27, %34, %35 : vector<2x512xi1>, vector<2x512xf32>
    %c0_6 = arith.constant 0 : index
    %c0_7 = arith.constant 0 : index
    %37 = vector.load %arg3[%c0_6, %c0_7] : memref<2x1024xf32, #tpu.memory_space<vmem>>, vector<2x512xf32>
    tpu.vector_store %arg3[%c0_6, %c0_7], %36 {strides = array<i32>} : memref<2x1024xf32, #tpu.memory_space<vmem>>, vector<2x512xf32>,
    %c0_8 = arith.constant 0 : index
    %c512 = arith.constant 512 : index
    %38 = vector.load %arg2[%c0_8, %c512] : memref<2x1024xf32, #tpu.memory_space<vmem>>, vector<2x512xf32>
    %cst_9 = arith.constant 2.000000e+00 : f32
    %39 = vector.broadcast %cst_9 : f32 to vector<2x512xf32>
    %40 = arith.mulf %38, %39 : vector<2x512xf32>
    %cst_10 = arith.constant 0.000000e+00 : f32
    %41 = vector.broadcast %cst_10 : f32 to vector<2x512xf32>
    %42 = arith.select %31, %40, %41 : vector<2x512xi1>, vector<2x512xf32>
    %c0_11 = arith.constant 0 : index
    %c512_12 = arith.constant 512 : index
    %43 = vector.load %arg3[%c0_11, %c512_12] : memref<2x1024xf32, #tpu.memory_space<vmem>>, vector<2x512xf32>
    tpu.vector_store %arg3[%c0_11, %c512_12], %42 {strides = array<i32>} : memref<2x1024xf32, #tpu.memory_space<vmem>>, vector<2x512xf32>,
    return
  }
  func.func @transform_0(%arg0: i32, %arg1: memref<1xi32, #tpu.memory_space<smem>>) -> (i32, i32) {
    %c0_i32 = arith.constant 0 : i32
    %c0_i32_0 = arith.constant 0 : i32
    return %arg0, %c0_i32 : i32, i32
  }
  func.func @transform_1(%arg0: i32, %arg1: memref<1xi32, #tpu.memory_space<smem>>) -> (i32, i32) {
    %c0_i32 = arith.constant 0 : i32
    %c0_i32_0 = arith.constant 0 : i32
    return %arg0, %c0_i32 : i32, i32
  }
}

</mosaic_0001>

<bundles_post_ra>
// kernel: tpu_custom_call.1
= control target key start
LH: loop header
LB: loop body
LE: loop exit
PB: predicated region body
PF: predicated region fallthrough
CT: control target
= control target key end

     0   :  { %8 = vsyncpa [#allocation5], 0  ;;  %s299_s0 = inlined_call_operand.<no memory space> [shape: s32[1], index: 0, kind: input, shape index: {}]   ;;  %s300_s1 = inlined_call_operand.hbm [shape: f32[2,1024], index: 1, kind: input, shape index: {}]   ;;  %s301_s2 = inlined_call_operand.hbm [shape: f32[2,1024], index: 2, kind: output, shape index: {}]  }
   0x1   :  { %9 = vsyncpa [#allocation6], 0  ;;  %s256_s9 = smov [#allocation4]  }
   0x2   :  { %s16_s10 = sshll.u32 %s256_s9, 4  ;;  %s17_s10 = int_to_ptr.vmem [resolvable:$true] %s16_s10 }
   0x3   :  { %s220_s11 = scalar_lea.vmem %s17_s10, 256  ;;  %p225_p1 = scmp.lt.s32.totalorder %s17_s10, %s17_s10 }
   0x4   :  { %p221_p0 = scmp.ne.s32.totalorder %s17_s10, %s220_s11  ;;  %p226_p2 = scmp.lt.s32.totalorder %s220_s11, %s220_s11 }
   0x6   :  { %p227_p3 = por %p226_p2, %p225_p1 }
   0x8   :  { %p228_p4 = pnand %p227_p3, %p221_p0 }
   0xa   :  { %231 = shalt.err (!%p228_p4)
}
   0xb   :  { %19 = dma.hbm_to_vmem [thread:$0]  %s300_s1, 256, %s17_s10, [#allocation5]  }
   0xc   :  { %252 = dma.done.wait [#allocation5], 256  }
   0xd   :  { %253 = vsyncadd [#allocation5], 4294967040  ;;  %v27_v0 = vlaneseq  ;;  %s24_s16 = smul.u32 2654435761, %s299_s0  ;;  %v257_v12 = vmov 1983009808  }
   0xe   :  { %v97_v13 = vunpack.c.l.s4 %v257_v12  ;;  %v92_v22 = vld [vmem:[#allocation4] sm:$0xff]  ;;  %v143_v23 = vld [vmem:[#allocation4 + $0x8] sm:$0xff]  ;;  %s258_s0 = smov [#allocation7]  }
   0xf   :  { %v28_v1 = vshrl.u32 %v27_v0, 7  ;;  %v30_v2 = vand.u32 127, %v27_v0  ;;  %v39_v7 = vstv %s24_s16  ;;  %v93_v29 = vmul.f32 2.0, %v92_v22  ;;  %s200_s1 = sshll.u32 %s258_s0, 4  ;;  %s201_s1 = int_to_ptr.vmem [resolvable:$true] %s200_s1 }
  0x10   :  { %v98_v24 = vunpack.c.0.s8 %v97_v13  ;;  %v144_v30 = vmul.f32 2.0, %v143_v23  ;;  %s232_s17 = scalar_lea.vmem %s201_s1, 256  ;;  %p237_p6 = scmp.lt.s32.totalorder %s201_s1, %s201_s1 }
  0x11   :  { %v31_v3 = vadd.s32 128, %v30_v2  ;;  %v32_v4 = vadd.s32 256, %v30_v2  ;;  %v33_v5 = vadd.s32 384, %v30_v2  ;;  %v34_v6 = vmul.u32 512, %v28_v1  ;;  %p233_p5 = scmp.ne.s32.totalorder %s201_s1, %s232_s17  ;;  %p238_p7 = scmp.lt.s32.totalorder %s232_s17, %s232_s17 }
  0x12   :  { %v280_v37 = vsub.s32 %v98_v24, %v28_v1  ;;  %v95_v40 = vcombine.high %v93_v29, %v93_v29  ;;  %v146_v41 = vcombine.high %v144_v30, %v144_v30 }
  0x13   :  { %v35_v8 = vadd.s32 %v34_v6, %v30_v2  ;;  %v36_v9 = vadd.s32 %v34_v6, %v31_v3  ;;  %v37_v10 = vadd.s32 %v34_v6, %v32_v4  ;;  %v38_v11 = vadd.s32 %v34_v6, %v33_v5  ;;  %p239_p8 = por %p238_p7, %p237_p6 }
  0x14   :  { %v102_v48 = vrot.slane %v93_v29, %v280_v37  ;;  %v153_v49 = vrot.slane %v144_v30, %v280_v37  ;;  %v109_v52 = vrot.slane %v95_v40, %v280_v37  ;;  %v160_v53 = vrot.slane %v146_v41, %v280_v37 }
  0x15   :  { %v40_v14 = vxor.u32 %v39_v7, %v35_v8  ;;  %v41_v15 = vxor.u32 %v39_v7, %v36_v9  ;;  %v42_v16 = vxor.u32 %v39_v7, %v37_v10  ;;  %v43_v17 = vxor.u32 %v39_v7, %v38_v11  ;;  %p240_p9 = pnand %p239_p8, %p233_p5 }
  0x16   :  { %v110_v60 = vcombine.high %v102_v48, %v102_v48  ;;  %v161_v61 = vcombine.high %v153_v49, %v153_v49  ;;  %v111_v0 = vcombine.high %v109_v52, %v109_v52  ;;  %v162_v1 = vcombine.high %v160_v53, %v160_v53 }
  0x17   :  { %v44_v18 = vshrl.u32 %v40_v14, 16  ;;  %v45_v19 = vshrl.u32 %v41_v15, 16  ;;  %v46_v20 = vshrl.u32 %v42_v16, 16  ;;  %v47_v21 = vshrl.u32 %v43_v17, 16 }
  0x19   :  { %v48_v25 = vxor.u32 %v44_v18, %v40_v14  ;;  %v49_v26 = vxor.u32 %v45_v19, %v41_v15  ;;  %v50_v27 = vxor.u32 %v46_v20, %v42_v16  ;;  %v51_v28 = vxor.u32 %v47_v21, %v43_v17 }
  0x1b   :  { %v52_v31 = vmul.u32 2146121005, %v48_v25  ;;  %v53_v32 = vmul.u32 2146121005, %v49_v26 }
  0x1c   :  { %v54_v33 = vmul.u32 2146121005, %v50_v27  ;;  %v55_v34 = vmul.u32 2146121005, %v51_v28 }
  0x1d   :  { %v56_v35 = vshrl.u32 %v52_v31, 15  ;;  %v57_v36 = vshrl.u32 %v53_v32, 15 }
  0x1e   :  { %v58_v38 = vshrl.u32 %v54_v33, 15  ;;  %v59_v39 = vshrl.u32 %v55_v34, 15 }
  0x1f   :  { %v60_v42 = vxor.u32 %v56_v35, %v52_v31  ;;  %v61_v43 = vxor.u32 %v57_v36, %v53_v32 }
  0x20   :  { %v62_v44 = vxor.u32 %v58_v38, %v54_v33  ;;  %v63_v45 = vxor.u32 %v59_v39, %v55_v34 }
  0x21   :  { %v64_v46 = vmul.u32 2221713035, %v60_v42  ;;  %v65_v47 = vmul.u32 2221713035, %v61_v43 }
  0x22   :  { %v66_v50 = vmul.u32 2221713035, %v62_v44  ;;  %v67_v51 = vmul.u32 2221713035, %v63_v45 }
  0x23   :  { %v68_v54 = vshrl.u32 %v64_v46, 16  ;;  %v69_v55 = vshrl.u32 %v65_v47, 16 }
  0x24   :  { %v70_v56 = vshrl.u32 %v66_v50, 16  ;;  %v71_v57 = vshrl.u32 %v67_v51, 16 }
  0x25   :  { %v72_v58 = vxor.u32 %v68_v54, %v64_v46  ;;  %v73_v59 = vxor.u32 %v69_v55, %v65_v47 }
  0x26   :  { %v74_v62 = vxor.u32 %v70_v56, %v66_v50  ;;  %v75_v63 = vxor.u32 %v71_v57, %v67_v51 }
  0x27   :  { %v76_v2 = vand.u32 65535, %v72_v58  ;;  %v77_v3 = vand.u32 65535, %v73_v59  ;;  %v84_v4 = vshrl.u32 %v72_v58, 16  ;;  %v85_v5 = vshrl.u32 %v73_v59, 16 }
  0x28   :  { %v78_v6 = vand.u32 65535, %v74_v62  ;;  %v79_v7 = vand.u32 65535, %v75_v63  ;;  %v86_v8 = vshrl.u32 %v74_v62, 16  ;;  %v87_v9 = vshrl.u32 %v75_v63, 16 }
  0x29   :  { %vm80_vm0 = vcmp.ge.u32.totalorder %v76_v2, 32768  ;;  %vm81_vm1 = vcmp.ge.u32.totalorder %v77_v3, 32768  ;;  %vm286_vm2 = vcmp.ge.u32.totalorder %v84_v4, 32768  ;;  %vm89_vm3 = vcmp.ge.u32.totalorder %v85_v5, 32768 }
  0x2a   :  { %vm82_vm4 = vcmp.ge.u32.totalorder %v78_v6, 32768  ;;  %vm83_vm5 = vcmp.ge.u32.totalorder %v79_v7, 32768  ;;  %v116_v11 = vsel %vm80_vm0, %v102_v48, 0.0  ;;  %v117_v12 = vsel %vm81_vm1, %v110_v60, 0.0 }
  0x2b   :  { %v118_v13 = vsel %vm82_vm4, %v109_v52, 0.0  ;;  %v119_v14 = vsel %vm83_vm5, %v111_v0, 0.0  ;;  %v124_v15 = vcombine.low %v116_v11, %v117_v12  ;;  %vm90_vm6 = vcmp.ge.u32.totalorder %v86_v8, 32768 }
  0x2c   :  { %v125_v16 = vcombine.low %v118_v13, %v119_v14  ;;  %vm91_vm7 = vcmp.ge.u32.totalorder %v87_v9, 32768  ;;  %v167_v17 = vsel %vm286_vm2, %v153_v49, 0.0  ;;  %v168_v18 = vsel %vm89_vm3, %v161_v61, 0.0 }
  0x2d   :  { %v132_v19 = vrot.slane %v124_v15, %v280_v37  ;;  %v169_v20 = vsel %vm90_vm6, %v160_v53, 0.0  ;;  %v170_v21 = vsel %vm91_vm7, %v162_v1, 0.0  ;;  %v175_v22 = vcombine.low %v167_v17, %v168_v18 }
  0x2e   :  { %v139_v23 = vrot.slane %v125_v16, %v280_v37  ;;  %v176_v24 = vcombine.low %v169_v20, %v170_v21 }
  0x2f   :  { %v183_v25 = vrot.slane %v175_v22, %v280_v37 }
  0x30   :  { %v140_v26 = vcombine.low %v132_v19, %v139_v23  ;;  %v190_v27 = vrot.slane %v176_v24, %v280_v37 }
  0x32   :  { %142 = vst [vmem:[#allocation7] sm:$0xff] %v140_v26  ;;  %v191_v28 = vcombine.low %v183_v25, %v190_v27 }
  0x34   :  { %193 = vst [vmem:[#allocation7 + $0x8] sm:$0xff] %v191_v28 }
  0x35   :  { %243 = shalt.err (!%p240_p9)
}
  0x36   :  { %203 = dma.vmem_to_hbm [thread:$0]  %s201_s1, 256, %s301_s2, [#allocation6]  }
  0x37   :  { %254 = dma.done.wait [#allocation6], 256  }
  0x38   :  { %255 = vsyncadd [#allocation6], 4294967040 }
  0x39   :  { %207 = vsyncpa [#allocation5], 1 }
  0x3a   :  { %208 = vsyncpa [#allocation6], 1 }

</bundles_post_ra>
